<compile_context>
chip_gen: v7x
topology: tpu7x:2x2x1
jax: 0.10.0
libtpu: 0.0.40
codegen_flags: <defaults>
</compile_context>

<pallas_src>
import jax
import jax.numpy as jnp
from jax.experimental import pallas as pl
from jax.experimental.pallas import tpu as pltpu

BN_EPS = 1e-5
TM_DEFAULT = 512   # rows (of N*Ho*Wo) per grid step
LANES = 128        # Cout padded to a full vreg lane width


def _round_up(x, m):
    return (x + m - 1) // m * m


# ---------- pass 1: conv matmul + per-tile BN partial sums -------------------
def conv_stats_kernel(patches_ref, w_ref, conv_ref, sum_ref, ssq_ref):
    # (TM, Kp) @ (Kp, Cp) on the MXU with f32 accumulation.
    conv = jnp.dot(patches_ref[...], w_ref[...],
                   preferred_element_type=jnp.float32)          # (TM, Cp) f32
    # Stats from the exact f32 accumulator (before the bf16 downcast).
    s = jnp.sum(conv, axis=0, keepdims=True)                    # (1, Cp)
    ss = jnp.sum(conv * conv, axis=0, keepdims=True)            # (1, Cp)
    conv_ref[...] = conv.astype(conv_ref.dtype)                 # bf16 writeback
    sum_ref[...] = s.reshape(sum_ref.shape)                     # (1, 1, Cp)
    ssq_ref[...] = ss.reshape(ssq_ref.shape)


# ---------- pass 2: fused BN affine (scale/shift) + ReLU ---------------------
def bn_relu_kernel(conv_ref, scale_ref, shift_ref, o_ref):
    y = conv_ref[...].astype(jnp.float32) * scale_ref[...] + shift_ref[...]
    o_ref[...] = jnp.maximum(y, 0.0).astype(o_ref.dtype)


def bn_conv2d_relu(x_nchw, weight_oihw, gamma, beta, *, stride=1, padding=1,
                   dilation=1, compute_dtype=jnp.bfloat16):
    """Forward pass of BN_Conv2d (groups=1, bias=False)."""
    N, Cin, H, W = x_nchw.shape
    Cout, Cin_w, Kh, Kw = weight_oihw.shape
    assert Cin == Cin_w, "groups != 1 not supported"
    Ho = (H + 2 * padding - dilation * (Kh - 1) - 1) // stride + 1
    Wo = (W + 2 * padding - dilation * (Kw - 1) - 1) // stride + 1

    # ---- glue: im2col in plain JAX (NCHW -> NHWC patches) ----
    x = jnp.transpose(x_nchw, (0, 2, 3, 1))
    xp = jnp.pad(x, ((0, 0), (padding, padding), (padding, padding), (0, 0)))
    cols = []
    for dy in range(Kh):
        for dx in range(Kw):
            y0 = dy * dilation
            x0 = dx * dilation
            cols.append(xp[:, y0:y0 + stride * Ho:stride,
                           x0:x0 + stride * Wo:stride, :])
    patches = jnp.stack(cols, axis=3)                 # [N, Ho, Wo, Kh*Kw, Cin]
    M = N * Ho * Wo
    K = Kh * Kw * Cin
    patches = patches.reshape(M, K)

    # ---- padding for lane/sublane-friendly layouts ----
    TM = max(8, min(TM_DEFAULT, _round_up(M, 8)))
    Mp = _round_up(M, TM)
    Kp = _round_up(K, 8)
    Cp = _round_up(Cout, LANES)
    n_tiles = Mp // TM

    patches_p = jnp.pad(patches, ((0, Mp - M), (0, Kp - K))).astype(compute_dtype)
    # PyTorch conv weight (Cout, Cin, Kh, Kw) -> (Kh, Kw, Cin, Cout) -> (K, Cout)
    w = jnp.transpose(weight_oihw, (2, 3, 1, 0)).reshape(K, Cout)
    w_p = jnp.pad(w, ((0, Kp - K), (0, Cp - Cout))).astype(compute_dtype)
    gamma_p = jnp.pad(gamma.astype(jnp.float32), (0, Cp - Cout))
    beta_p = jnp.pad(beta.astype(jnp.float32), (0, Cp - Cout))

    itemsize = jnp.dtype(compute_dtype).itemsize
    cost1 = pl.CostEstimate(
        flops=2 * Mp * Kp * Cp,
        transcendentals=0,
        bytes_accessed=(Mp * Kp * itemsize + Kp * Cp * itemsize
                        + Mp * Cp * itemsize + 2 * n_tiles * Cp * 4),
    )

    # ---- pass 1: conv + partial (sum, sum_sq) per tile ----
    conv_out, sums, ssqs = pl.pallas_call(
        conv_stats_kernel,
        out_shape=(
            jax.ShapeDtypeStruct((Mp, Cp), compute_dtype),
            jax.ShapeDtypeStruct((n_tiles, 1, Cp), jnp.float32),
            jax.ShapeDtypeStruct((n_tiles, 1, Cp), jnp.float32),
        ),
        grid_spec=pltpu.PrefetchScalarGridSpec(
            num_scalar_prefetch=0,
            grid=(n_tiles,),
            in_specs=[
                pl.BlockSpec((TM, Kp), lambda i: (i, 0)),
                pl.BlockSpec((Kp, Cp), lambda i: (0, 0)),
            ],
            out_specs=[
                pl.BlockSpec((TM, Cp), lambda i: (i, 0)),
                pl.BlockSpec((1, 1, Cp), lambda i: (i, 0, 0)),
                pl.BlockSpec((1, 1, Cp), lambda i: (i, 0, 0)),
            ],
        ),
        compiler_params=pltpu.CompilerParams(dimension_semantics=("parallel",)),
        cost_estimate=cost1,
    )(patches_p, w_p)

    # ---- tiny JAX combine: global BN stats -> per-channel scale/shift ----
    # Padded M rows are all-zero patches -> zero conv rows -> contribute 0 to
    # both sums, so dividing by the *real* M gives exact global statistics.
    m = jnp.float32(M)
    total_sum = jnp.sum(sums[:, 0, :], axis=0)            # (Cp,) f32
    total_ssq = jnp.sum(ssqs[:, 0, :], axis=0)            # (Cp,) f32
    mean = total_sum / m
    var = jnp.maximum(total_ssq / m - mean * mean, 0.0)   # biased variance
    inv_std = jax.lax.rsqrt(var + BN_EPS)
    scale = (gamma_p * inv_std).reshape(1, Cp)
    shift = (beta_p - mean * gamma_p * inv_std).reshape(1, Cp)

    cost2 = pl.CostEstimate(
        flops=2 * Mp * Cp,
        transcendentals=0,
        bytes_accessed=Mp * Cp * itemsize + Mp * Cp * 4 + 2 * Cp * 4,
    )

    # ---- pass 2: fused affine + ReLU ----
    out = pl.pallas_call(
        bn_relu_kernel,
        out_shape=jax.ShapeDtypeStruct((Mp, Cp), jnp.float32),
        grid_spec=pltpu.PrefetchScalarGridSpec(
            num_scalar_prefetch=0,
            grid=(n_tiles,),
            in_specs=[
                pl.BlockSpec((TM, Cp), lambda i: (i, 0)),
                pl.BlockSpec((1, Cp), lambda i: (0, 0)),
                pl.BlockSpec((1, Cp), lambda i: (0, 0)),
            ],
            out_specs=pl.BlockSpec((TM, Cp), lambda i: (i, 0)),
        ),
        compiler_params=pltpu.CompilerParams(dimension_semantics=("parallel",)),
        cost_estimate=cost2,
    )(conv_out, scale, shift)

    # slice padding off, back to NCHW
    out = out[:M, :Cout].reshape(N, Ho, Wo, Cout)
    return jnp.transpose(out, (0, 3, 1, 2))


def _reference(x, w, gamma, beta, stride, padding, dilation):
    conv = jax.lax.conv_general_dilated(
        x, w, (stride, stride),
        [(padding, padding), (padding, padding)],
        rhs_dilation=(dilation, dilation),
        dimension_numbers=("NCHW", "OIHW", "NCHW"),
    )
    mean = conv.mean(axis=(0, 2, 3), keepdims=True)
    var = ((conv - mean) ** 2).mean(axis=(0, 2, 3), keepdims=True)
    y = gamma.reshape(1, -1, 1, 1) * (conv - mean) / jnp.sqrt(var + BN_EPS) \
        + beta.reshape(1, -1, 1, 1)
    return jnp.maximum(y, 0.0)


if __name__ == "__main__":
    # BN_Conv2d(in_channels=4, out_channels=8, kernel_size=3, stride=1, padding=1)
    N, Cin, H, W = 2, 4, 16, 16
    Cout, Kh, Kw = 8, 3, 3
    stride, padding, dilation = 1, 1, 1

    key = jax.random.PRNGKey(0)
    kx, kw, kg, kb = jax.random.split(key, 4)
    x = jax.random.normal(kx, (N, Cin, H, W), dtype=jnp.float32)
    weight = jax.random.normal(kw, (Cout, Cin, Kh, Kw), dtype=jnp.float32) * 0.1
    gamma = 1.0 + 0.1 * jax.random.normal(kg, (Cout,), dtype=jnp.float32)
    beta = 0.1 * jax.random.normal(kb, (Cout,), dtype=jnp.float32)

    out = bn_conv2d_relu(x, weight, gamma, beta,
                         stride=stride, padding=padding, dilation=dilation)
    out = jax.block_until_ready(out)

    ref = _reference(x, weight, gamma, beta, stride, padding, dilation)
    assert out.shape == ref.shape == (N, Cout, H, W)
    # bf16 MXU inputs + bf16 conv intermediate (f32 accumulation / f32 BN
    # statistics) -> loosened tolerance.
    assert jnp.allclose(out, ref, atol=3e-2, rtol=3e-2), "mismatch vs reference"

    print("KERNEL_OK")
</pallas_src>

<mosaic_0001>
module attributes {stable_mosaic.version = 11 : i64} {
  func.func @conv_stats_kernel(%arg0: i32, %arg1: memref<512x40xbf16, #tpu.memory_space<vmem>>, %arg2: memref<40x128xbf16, #tpu.memory_space<vmem>>, %arg3: memref<512x128xbf16, #tpu.memory_space<vmem>>, %arg4: memref<1x1x128xf32, #tpu.memory_space<vmem>>, %arg5: memref<1x1x128xf32, #tpu.memory_space<vmem>>) attributes {dimension_semantics = [#tpu.dimension_semantics<parallel>], iteration_bounds = array<i64: 1>, scalar_prefetch = 0 : i64, scratch_operands = 0 : i64, tpu.core_type = #tpu.core_type<tc>, window_params = [{transform_indices = @transform_0, window_bounds = array<i64: 512, 40>}, {pipeline_mode = #tpu.pipeline_mode<synchronous>, transform_indices = @transform_1, window_bounds = array<i64: 40, 128>}, {transform_indices = @transform_2, window_bounds = array<i64: 512, 128>}, {transform_indices = @transform_3, window_bounds = array<i64: 1, 1, 128>}, {transform_indices = @transform_4, window_bounds = array<i64: 1, 1, 128>}]} {
    %c0 = arith.constant 0 : index
    %c0_0 = arith.constant 0 : index
    %0 = vector.load %arg1[%c0, %c0_0] : memref<512x40xbf16, #tpu.memory_space<vmem>>, vector<512x40xbf16>
    %c0_1 = arith.constant 0 : index
    %c0_2 = arith.constant 0 : index
    %1 = vector.load %arg2[%c0_1, %c0_2] : memref<40x128xbf16, #tpu.memory_space<vmem>>, vector<40x128xbf16>
    %cst = arith.constant dense<0.000000e+00> : vector<512x128xf32>
    %2 = tpu.matmul %0, %1, %cst {dimension_numbers = #tpu.dot_dimension_numbers<[1], [0], [0], [1], [0, 0, 1, 1], [], []>} : vector<512x40xbf16>, vector<40x128xbf16>, vector<512x128xf32> -> vector<512x128xf32>
    %cst_3 = arith.constant dense<0.000000e+00> : vector<128xf32>
    %3 = vector.multi_reduction <add>, %2, %cst_3 [0] : vector<512x128xf32> to vector<128xf32>
    %4 = vector.shape_cast %3 : vector<128xf32> to vector<1x128xf32>
    %5 = arith.mulf %2, %2 : vector<512x128xf32>
    %cst_4 = arith.constant dense<0.000000e+00> : vector<128xf32>
    %6 = vector.multi_reduction <add>, %5, %cst_4 [0] : vector<512x128xf32> to vector<128xf32>
    %7 = vector.shape_cast %6 : vector<128xf32> to vector<1x128xf32>
    %8 = arith.truncf %2 : vector<512x128xf32> to vector<512x128xbf16>
    %c0_5 = arith.constant 0 : index
    %c0_6 = arith.constant 0 : index
    %9 = vector.load %arg3[%c0_5, %c0_6] : memref<512x128xbf16, #tpu.memory_space<vmem>>, vector<512x128xbf16>
    tpu.vector_store %arg3[%c0_5, %c0_6], %8 {strides = array<i32>} : memref<512x128xbf16, #tpu.memory_space<vmem>>, vector<512x128xbf16>,
    %10 = vector.shape_cast %4 : vector<1x128xf32> to vector<1x1x128xf32>
    %c0_7 = arith.constant 0 : index
    %c0_8 = arith.constant 0 : index
    %c0_9 = arith.constant 0 : index
    %11 = vector.load %arg4[%c0_7, %c0_8, %c0_9] : memref<1x1x128xf32, #tpu.memory_space<vmem>>, vector<1x1x128xf32>
    tpu.vector_store %arg4[%c0_7, %c0_8, %c0_9], %10 {strides = array<i32>} : memref<1x1x128xf32, #tpu.memory_space<vmem>>, vector<1x1x128xf32>,
    %12 = vector.shape_cast %7 : vector<1x128xf32> to vector<1x1x128xf32>
    %c0_10 = arith.constant 0 : index
    %c0_11 = arith.constant 0 : index
    %c0_12 = arith.constant 0 : index
    %13 = vector.load %arg5[%c0_10, %c0_11, %c0_12] : memref<1x1x128xf32, #tpu.memory_space<vmem>>, vector<1x1x128xf32>
    tpu.vector_store %arg5[%c0_10, %c0_11, %c0_12], %12 {strides = array<i32>} : memref<1x1x128xf32, #tpu.memory_space<vmem>>, vector<1x1x128xf32>,
    return
  }
  func.func @transform_0(%arg0: i32) -> (i32, i32) {
    %c0_i32 = arith.constant 0 : i32
    %c0_i32_0 = arith.constant 0 : i32
    return %arg0, %c0_i32 : i32, i32
  }
  func.func @transform_1(%arg0: i32) -> (i32, i32) {
    %c0_i32 = arith.constant 0 : i32
    %c0_i32_0 = arith.constant 0 : i32
    %c0_i32_1 = arith.constant 0 : i32
    return %c0_i32, %c0_i32_0 : i32, i32
  }
  func.func @transform_2(%arg0: i32) -> (i32, i32) {
    %c0_i32 = arith.constant 0 : i32
    %c0_i32_0 = arith.constant 0 : i32
    return %arg0, %c0_i32 : i32, i32
  }
  func.func @transform_3(%arg0: i32) -> (i32, i32, i32) {
    %c0_i32 = arith.constant 0 : i32
    %c0_i32_0 = arith.constant 0 : i32
    %c0_i32_1 = arith.constant 0 : i32
    return %arg0, %c0_i32, %c0_i32_0 : i32, i32, i32
  }
  func.func @transform_4(%arg0: i32) -> (i32, i32, i32) {
    %c0_i32 = arith.constant 0 : i32
    %c0_i32_0 = arith.constant 0 : i32
    %c0_i32_1 = arith.constant 0 : i32
    return %arg0, %c0_i32, %c0_i32_0 : i32, i32, i32
  }
}

</mosaic_0001>

<bundles_post_ra>
// kernel: tpu_custom_call.1
= control target key start
LH: loop header
LB: loop body
LE: loop exit
PB: predicated region body
PF: predicated region fallthrough
CT: control target
= control target key end

     0   :  { %10 = vsyncpa [#allocation3], 0  ;;  %vm261_vm0 = vcmask 326656   ;;  %vm358_vm1 = vcmask 1043456   ;;  %s2230_s0 = inlined_call_operand.vmem [shape: bf16[512,40], index: 0, kind: input, shape index: {}]   ;;  %s2231_s1 = inlined_call_operand.vmem [shape: bf16[40,128], index: 1, kind: input, shape index: {}]   ;;  %s2232_s2 = inlined_call_operand.hbm [shape: bf16[512,128], index: 2, kind: output, shape index: {0}]   ;;  %s2233_s3 = inlined_call_operand.hbm [shape: f32[1,1,128], index: 3, kind: output, shape index: {1}]   ;;  %s2234_s4 = inlined_call_operand.hbm [shape: f32[1,1,128], index: 4, kind: output, shape index: {2}]  }
   0x1   :  { %v1722_v0 = vld [vmem:[%s2231_s1] sm:$0xff]   ;;  %v1723_v1 = vld [vmem:[%s2231_s1 + $0x8] sm:$0xff]   ;;  %v1724_v3 = vld [vmem:[%s2231_s1 + $0x10] ss:$0 sps:$4 sm:$0xff]  }
   0x2   :  { %1639 = vmatprep.subr.bf16.mxu0 %v1722_v0  ;;  %1709 = vmatprep.subr.bf16.mxu1 %v1722_v0  ;;  %v1725_v2 = vld [vmem:[%s2230_s0] sm:$0xff]   ;;  %v360_v4 = vsel %vm358_vm1, %v1724_v3, 0  ;;  %v1726_v5 = vld [vmem:[%s2230_s0 + $0x8] sm:$0xff]   ;;  %v1727_v6 = vld [vmem:[%s2230_s0 + $0x10] sm:$0xff]  }
   0x3   :  { %1640 = vmatpush3.bf16.msra.mxu0 %v1722_v0  ;;  %1712 = vmatpush3.bf16.msra.mxu1 %v1722_v0  ;;  %v1728_v7 = vld [vmem:[%s2230_s0 + $0x18] sm:$0xff]   ;;  %v1729_v8 = vld [vmem:[%s2230_s0 + $0x20] sm:$0xff]   ;;  %v1742_v10 = vld [vmem:[%s2230_s0 + $0x88] sm:$0xff]  }
   0x4   :  { %1641 = vmatprep.subr.bf16.mxu0 %v1723_v1  ;;  %1710 = vmatprep.subr.bf16.mxu1 %v1723_v1  ;;  %v1741_v9 = vld [vmem:[%s2230_s0 + $0x80] sm:$0xff]   ;;  %v1743_v11 = vld [vmem:[%s2230_s0 + $0x90] sm:$0xff]   ;;  %v1730_v12 = vld [vmem:[%s2230_s0 + $0x28] sm:$0xff]  }
   0x5   :  { %1645 = vmatprep.mubr.msk.bf16.mxu0 %vm261_vm0, %v1725_v2  ;;  %1677 = vmatprep.mubr.msk.bf16.mxu1 %vm261_vm0, %v1741_v9  ;;  %v1731_v13 = vld [vmem:[%s2230_s0 + $0x30] sm:$0xff]   ;;  %v1744_v14 = vld [vmem:[%s2230_s0 + $0x98] sm:$0xff]   ;;  %v1745_v15 = vld [vmem:[%s2230_s0 + $0xa0] sm:$0xff]  }
   0x6   :  { %v1732_v16 = vld [vmem:[%s2230_s0 + $0x38] sm:$0xff]   ;;  %v1746_v17 = vld [vmem:[%s2230_s0 + $0xa8] sm:$0xff]  }
   0x7   :  { %1642 = vmatpush3.bf16.msra.mxu0 %v1723_v1  ;;  %1713 = vmatpush3.bf16.msra.mxu1 %v1723_v1 }
   0x8   :  { %1715 = vmatprep.subr.msk.bf16.mxu0 %vm358_vm1, %v1724_v3  ;;  %1716 = vmatprep.subr.msk.bf16.mxu1 %vm358_vm1, %v1724_v3 }
   0xb   :  { %1644 = vmatpush3.bf16.msra.mxu0 %v360_v4  ;;  %1714 = vmatpush3.bf16.msra.mxu1 %v360_v4 }
   0xe   :  { %1646 = vmatmul.mubr.msk.bf16.vlgmr.msra.gmra.mrb[0].mxu0 %vm261_vm0, %v1726_v5  ;;  %1678 = vmatmul.mubr.msk.bf16.vlgmr.msra.gmra.mrb[0].mxu1 %vm261_vm0, %v1742_v10 }
   0xf   :  { %1649 = vmatprep.mubr.msk.bf16.mxu0 %vm261_vm0, %v1727_v6  ;;  %1681 = vmatprep.mubr.msk.bf16.mxu1 %vm261_vm0, %v1743_v11 }
  0x16   :  { %1650 = vmatmul.mubr.msk.bf16.gmra.mrb[4].mxu0 %vm261_vm0, %v1728_v7  ;;  %1682 = vmatmul.mubr.msk.bf16.gmra.mrb[4].mxu1 %vm261_vm0, %v1744_v14 }
  0x17   :  { %1653 = vmatprep.mubr.msk.bf16.mxu0 %vm261_vm0, %v1729_v8  ;;  %1685 = vmatprep.mubr.msk.bf16.mxu1 %vm261_vm0, %v1745_v15 }
  0x1e   :  { %1654 = vmatmul.mubr.msk.bf16.gmra.mrb[8].mxu0 %vm261_vm0, %v1730_v12 }
  0x1f   :  { %1657 = vmatprep.mubr.msk.bf16.mxu0 %vm261_vm0, %v1731_v13 }
  0x20   :  { %11 = vsyncpa [#allocation5], 0  ;;  %v1733_v18 = vld [vmem:[%s2230_s0 + $0x40] sm:$0xff]   ;;  %v1747_v19 = vld [vmem:[%s2230_s0 + $0xb0] sm:$0xff]   ;;  %1686 = vmatmul.mubr.msk.bf16.gmra.mrb[8].mxu1 %vm261_vm0, %v1746_v17 }
  0x21   :  { %1689 = vmatprep.mubr.msk.bf16.mxu1 %vm261_vm0, %v1747_v19  ;;  %v1734_v20 = vld [vmem:[%s2230_s0 + $0x48] sm:$0xff]   ;;  %v1748_v21 = vld [vmem:[%s2230_s0 + $0xb8] sm:$0xff]   ;;  %v1735_v22 = vld [vmem:[%s2230_s0 + $0x50] sm:$0xff]  }
  0x22   :  { %v1749_v23 = vld [vmem:[%s2230_s0 + $0xc0] sm:$0xff]   ;;  %v1736_v24 = vld [vmem:[%s2230_s0 + $0x58] sm:$0xff]   ;;  %v1750_v25 = vld [vmem:[%s2230_s0 + $0xc8] sm:$0xff]  }
  0x23   :  { %v1737_v26 = vld [vmem:[%s2230_s0 + $0x60] sm:$0xff]   ;;  %v1751_v27 = vld [vmem:[%s2230_s0 + $0xd0] sm:$0xff]   ;;  %v1738_v28 = vld [vmem:[%s2230_s0 + $0x68] sm:$0xff]  }
  0x24   :  { %v1752_v29 = vld [vmem:[%s2230_s0 + $0xd8] sm:$0xff]   ;;  %v1739_v30 = vld [vmem:[%s2230_s0 + $0x70] sm:$0xff]   ;;  %v1753_v31 = vld [vmem:[%s2230_s0 + $0xe0] sm:$0xff]  }
  0x25   :  { %v1740_v32 = vld [vmem:[%s2230_s0 + $0x78] sm:$0xff]   ;;  %v1754_v33 = vld [vmem:[%s2230_s0 + $0xe8] sm:$0xff]   ;;  %v1755_v34 = vld [vmem:[%s2230_s0 + $0xf0] sm:$0xff]  }
  0x26   :  { %1658 = vmatmul.mubr.msk.bf16.gmra.mrb[12].mxu0 %vm261_vm0, %v1732_v16  ;;  %v1756_v35 = vld [vmem:[%s2230_s0 + $0xf8] sm:$0xff]   ;;  %s1827_s0 = smov [#allocation2]  }
  0x27   :  { %1661 = vmatprep.mubr.msk.bf16.mxu0 %vm261_vm0, %v1733_v18  ;;  %s1180_s30 = sshll.u32 %s1827_s0, 4  ;;  %s1181_s30 = int_to_ptr.vmem [resolvable:$true] %s1180_s30 }
  0x28   :  { %1690 = vmatmul.mubr.msk.bf16.gmra.mrb[12].mxu1 %vm261_vm0, %v1748_v21  ;;  %s1757_s5 = scalar_lea.vmem %s1181_s30, 4096  ;;  %p1762_p1 = scmp.lt.s32.totalorder %s1181_s30, %s1181_s30 }
  0x29   :  { %1693 = vmatprep.mubr.msk.bf16.mxu1 %vm261_vm0, %v1749_v23  ;;  %p1758_p0 = scmp.ne.s32.totalorder %s1181_s30, %s1757_s5  ;;  %p1763_p2 = scmp.lt.s32.totalorder %s1757_s5, %s1757_s5 }
  0x2b   :  { %p1764_p3 = por %p1763_p2, %p1762_p1 }
  0x2d   :  { %p1765_p4 = pnand %p1764_p3, %p1758_p0 }
  0x2e   :  { %1662 = vmatmul.mubr.msk.bf16.gmra.mrb[16].mxu0 %vm261_vm0, %v1734_v20 }
  0x2f   :  { %1665 = vmatprep.mubr.msk.bf16.mxu0 %vm261_vm0, %v1735_v22 }
  0x30   :  { %1694 = vmatmul.mubr.msk.bf16.gmra.mrb[16].mxu1 %vm261_vm0, %v1750_v25 }
  0x31   :  { %1697 = vmatprep.mubr.msk.bf16.mxu1 %vm261_vm0, %v1751_v27 }
  0x36   :  { %1666 = vmatmul.mubr.msk.bf16.gmra.mrb[20].mxu0 %vm261_vm0, %v1736_v24 }
  0x37   :  { %1669 = vmatprep.mubr.msk.bf16.mxu0 %vm261_vm0, %v1737_v26 }
  0x38   :  { %1698 = vmatmul.mubr.msk.bf16.gmra.mrb[20].mxu1 %vm261_vm0, %v1752_v29 }
  0x39   :  { %1701 = vmatprep.mubr.msk.bf16.mxu1 %vm261_vm0, %v1753_v31 }
  0x3e   :  { %1670 = vmatmul.mubr.msk.bf16.gmra.mrb[24].mxu0 %vm261_vm0, %v1738_v28 }
  0x3f   :  { %1673 = vmatprep.mubr.msk.bf16.mxu0 %vm261_vm0, %v1739_v30 }
  0x40   :  { %1702 = vmatmul.mubr.msk.bf16.gmra.mrb[24].mxu1 %vm261_vm0, %v1754_v33 }
  0x41   :  { %1705 = vmatprep.mubr.msk.bf16.mxu1 %vm261_vm0, %v1755_v34 }
  0x46   :  { %1674 = vmatmul.mubr.msk.bf16.gmra.mrb[28].mxu0 %vm261_vm0, %v1740_v32 }
  0x48   :  { %1706 = vmatmul.mubr.msk.bf16.gmra.mrb[28].mxu1 %vm261_vm0, %v1756_v35 }
  0xe1   :  { %v1647_v36 = vpop.f32.mrb[0].mxu0  ;;  %v1994_v52 = vpop.f32.mrb[0].mxu1 }
  0xe2   :  { %v396_v37 = vpop.f32.mrb[1].mxu0  ;;  %v722_v45 = vmul.f32 %v1647_v36, %v1647_v36  ;;  %v1996_v54 = vpop.f32.mrb[1].mxu1 }
  0xe3   :  { %v1648_v38 = vpop.f32.mrb[2].mxu0  ;;  %v720_v41 = vmul.f32 %v396_v37, %v396_v37  ;;  %v1998_v59 = vpop.f32.mrb[2].mxu1 }
  0xe4   :  { %v1421_v39 = vpack.c.bf16 %v1648_v38, %v1647_v36  ;;  %v399_v40 = vpop.f32.mrb[3].mxu0  ;;  %v723_v48 = vmul.f32 %v1648_v38, %v1648_v38  ;;  %v1501_v62 = vpack.c.bf16 %v1998_v59, %v1994_v52  ;;  %v2002_v63 = vpop.f32.mrb[3].mxu1 }
  0xe5   :  { %v651_v42 = vadd.f32 %v399_v40, %v396_v37  ;;  %v721_v43 = vmul.f32 %v399_v40, %v399_v40  ;;  %v1416_v44 = vpack.c.bf16 %v399_v40, %v396_v37  ;;  %v1496_v4 = vpack.c.bf16 %v2002_v63, %v1996_v54 }
  0xe6   :  { %1573 = vst [vmem:[#allocation2 + $0x8] sm:$0xff] %v1421_v39   ;;  %1589 = vst [vmem:[#allocation2 + $0x88] sm:$0xff] %v1501_v62  }
  0xe7   :  { %v652_v46 = vadd.f32 %v1647_v36, %v651_v42  ;;  %v784_v47 = vadd.f32 %v721_v43, %v720_v41  ;;  %1417 = vst [vmem:[#allocation2] sm:$0xff] %v1416_v44   ;;  %1588 = vst [vmem:[#allocation2 + $0x80] sm:$0xff] %v1496_v4  }
  0xe9   :  { %v785_v49 = vadd.f32 %v784_v47, %v722_v45  ;;  %v1651_v50 = vpop.f32.mrb[4].mxu0  ;;  %v653_v51 = vadd.f32 %v1648_v38, %v652_v46  ;;  %v2006_v12 = vpop.f32.mrb[4].mxu1 }
  0xea   :  { %v412_v53 = vpop.f32.mrb[5].mxu0  ;;  %v726_v5 = vmul.f32 %v1651_v50, %v1651_v50  ;;  %v2008_v14 = vpop.f32.mrb[5].mxu1 }
  0xeb   :  { %v654_v55 = vadd.f32 %v653_v51, %v412_v53  ;;  %v724_v56 = vmul.f32 %v412_v53, %v412_v53  ;;  %v786_v57 = vadd.f32 %v785_v49, %v723_v48  ;;  %v1652_v58 = vpop.f32.mrb[6].mxu0  ;;  %v2010_v19 = vpop.f32.mrb[6].mxu1 }
  0xec   :  { %v1431_v60 = vpack.c.bf16 %v1652_v58, %v1651_v50  ;;  %v415_v61 = vpop.f32.mrb[7].mxu0  ;;  %v727_v8 = vmul.f32 %v1652_v58, %v1652_v58  ;;  %v1511_v22 = vpack.c.bf16 %v2010_v19, %v2006_v12  ;;  %v2014_v23 = vpop.f32.mrb[7].mxu1 }
  0xed   :  { %v787_v0 = vadd.f32 %v786_v57, %v724_v56  ;;  %v655_v1 = vadd.f32 %v654_v55, %v415_v61  ;;  %v725_v2 = vmul.f32 %v415_v61, %v415_v61  ;;  %v1426_v3 = vpack.c.bf16 %v415_v61, %v412_v53 }
  0xee   :  { %1575 = vst [vmem:[#allocation2 + $0x18] sm:$0xff] %v1431_v60   ;;  %1591 = vst [vmem:[#allocation2 + $0x98] sm:$0xff] %v1511_v22   ;;  %v1506_v28 = vpack.c.bf16 %v2014_v23, %v2008_v14 }
  0xef   :  { %v656_v6 = vadd.f32 %v1651_v50, %v655_v1  ;;  %v788_v7 = vadd.f32 %v787_v0, %v725_v2  ;;  %1574 = vst [vmem:[#allocation2 + $0x10] sm:$0xff] %v1426_v3  }
  0xf0   :  { %1590 = vst [vmem:[#allocation2 + $0x90] sm:$0xff] %v1506_v28  }
  0xf1   :  { %v789_v9 = vadd.f32 %v788_v7, %v726_v5  ;;  %v1655_v10 = vpop.f32.mrb[8].mxu0  ;;  %v657_v11 = vadd.f32 %v1652_v58, %v656_v6 }
  0xf2   :  { %v428_v13 = vpop.f32.mrb[9].mxu0  ;;  %v730_v29 = vmul.f32 %v1655_v10, %v1655_v10 }
  0xf3   :  { %v658_v15 = vadd.f32 %v657_v11, %v428_v13  ;;  %v728_v16 = vmul.f32 %v428_v13, %v428_v13  ;;  %v790_v17 = vadd.f32 %v789_v9, %v727_v8  ;;  %v1656_v18 = vpop.f32.mrb[10].mxu0  ;;  %v2018_v36 = vpop.f32.mrb[8].mxu1 }
  0xf4   :  { %v1441_v20 = vpack.c.bf16 %v1656_v18, %v1655_v10  ;;  %v431_v21 = vpop.f32.mrb[11].mxu0  ;;  %v731_v32 = vmul.f32 %v1656_v18, %v1656_v18  ;;  %v2020_v38 = vpop.f32.mrb[9].mxu1 }
  0xf5   :  { %v791_v24 = vadd.f32 %v790_v17, %v728_v16  ;;  %v659_v25 = vadd.f32 %v658_v15, %v431_v21  ;;  %v729_v26 = vmul.f32 %v431_v21, %v431_v21  ;;  %v1436_v27 = vpack.c.bf16 %v431_v21, %v428_v13  ;;  %v2022_v43 = vpop.f32.mrb[10].mxu1 }
  0xf6   :  { %1577 = vst [vmem:[#allocation2 + $0x28] sm:$0xff] %v1441_v20   ;;  %v1521_v46 = vpack.c.bf16 %v2022_v43, %v2018_v36  ;;  %v2026_v47 = vpop.f32.mrb[11].mxu1 }
  0xf7   :  { %v660_v30 = vadd.f32 %v1655_v10, %v659_v25  ;;  %v792_v31 = vadd.f32 %v791_v24, %v729_v26  ;;  %1576 = vst [vmem:[#allocation2 + $0x20] sm:$0xff] %v1436_v27   ;;  %v1516_v53 = vpack.c.bf16 %v2026_v47, %v2020_v38 }
  0xf8   :  { %1593 = vst [vmem:[#allocation2 + $0xa8] sm:$0xff] %v1521_v46  }
  0xf9   :  { %v793_v33 = vadd.f32 %v792_v31, %v730_v29  ;;  %v1659_v34 = vpop.f32.mrb[12].mxu0  ;;  %v661_v35 = vadd.f32 %v1656_v18, %v660_v30  ;;  %1592 = vst [vmem:[#allocation2 + $0xa0] sm:$0xff] %v1516_v53  }
  0xfa   :  { %v444_v37 = vpop.f32.mrb[13].mxu0  ;;  %v734_v55 = vmul.f32 %v1659_v34, %v1659_v34 }
  0xfb   :  { %v662_v39 = vadd.f32 %v661_v35, %v444_v37  ;;  %v732_v40 = vmul.f32 %v444_v37, %v444_v37  ;;  %v794_v41 = vadd.f32 %v793_v33, %v731_v32  ;;  %v1660_v42 = vpop.f32.mrb[14].mxu0  ;;  %v2030_v0 = vpop.f32.mrb[12].mxu1 }
  0xfc   :  { %v1451_v44 = vpack.c.bf16 %v1660_v42, %v1659_v34  ;;  %v447_v45 = vpop.f32.mrb[15].mxu0  ;;  %v735_v58 = vmul.f32 %v1660_v42, %v1660_v42  ;;  %v2032_v2 = vpop.f32.mrb[13].mxu1 }
  0xfd   :  { %v795_v48 = vadd.f32 %v794_v41, %v732_v40  ;;  %v663_v49 = vadd.f32 %v662_v39, %v447_v45  ;;  %v733_v50 = vmul.f32 %v447_v45, %v447_v45  ;;  %v1446_v51 = vpack.c.bf16 %v447_v45, %v444_v37  ;;  %v2034_v7 = vpop.f32.mrb[14].mxu1 }
  0xfe   :  { %1579 = vst [vmem:[#allocation2 + $0x38] sm:$0xff] %v1451_v44   ;;  %v1531_v10 = vpack.c.bf16 %v2034_v7, %v2030_v0  ;;  %v2038_v11 = vpop.f32.mrb[15].mxu1 }
  0xff   :  { %v664_v56 = vadd.f32 %v1659_v34, %v663_v49  ;;  %v796_v57 = vadd.f32 %v795_v48, %v733_v50  ;;  %1578 = vst [vmem:[#allocation2 + $0x30] sm:$0xff] %v1446_v51   ;;  %v1526_v18 = vpack.c.bf16 %v2038_v11, %v2032_v2 }
 0x100   :  { %1595 = vst [vmem:[#allocation2 + $0xb8] sm:$0xff] %v1531_v10  }
 0x101   :  { %v797_v60 = vadd.f32 %v796_v57, %v734_v55  ;;  %v1663_v61 = vpop.f32.mrb[16].mxu0  ;;  %v665_v62 = vadd.f32 %v1660_v42, %v664_v56  ;;  %1594 = vst [vmem:[#allocation2 + $0xb0] sm:$0xff] %v1526_v18  }
 0x102   :  { %v460_v1 = vpop.f32.mrb[17].mxu0  ;;  %v738_v20 = vmul.f32 %v1663_v61, %v1663_v61 }
 0x103   :  { %v666_v3 = vadd.f32 %v665_v62, %v460_v1  ;;  %v736_v4 = vmul.f32 %v460_v1, %v460_v1  ;;  %v798_v5 = vadd.f32 %v797_v60, %v735_v58  ;;  %v1664_v6 = vpop.f32.mrb[18].mxu0  ;;  %v2042_v28 = vpop.f32.mrb[16].mxu1 }
 0x104   :  { %v1461_v8 = vpack.c.bf16 %v1664_v6, %v1663_v61  ;;  %v463_v9 = vpop.f32.mrb[19].mxu0  ;;  %v739_v24 = vmul.f32 %v1664_v6, %v1664_v6  ;;  %v2044_v30 = vpop.f32.mrb[17].mxu1 }
 0x105   :  { %v799_v13 = vadd.f32 %v798_v5, %v736_v4  ;;  %v667_v15 = vadd.f32 %v666_v3, %v463_v9  ;;  %v737_v16 = vmul.f32 %v463_v9, %v463_v9  ;;  %v1456_v17 = vpack.c.bf16 %v463_v9, %v460_v1  ;;  %v2046_v35 = vpop.f32.mrb[18].mxu1 }
 0x106   :  { %1581 = vst [vmem:[#allocation2 + $0x48] sm:$0xff] %v1461_v8   ;;  %v1541_v40 = vpack.c.bf16 %v2046_v35, %v2042_v28  ;;  %v2050_v41 = vpop.f32.mrb[19].mxu1 }
 0x107   :  { %v668_v21 = vadd.f32 %v1663_v61, %v667_v15  ;;  %v800_v22 = vadd.f32 %v799_v13, %v737_v16  ;;  %1580 = vst [vmem:[#allocation2 + $0x40] sm:$0xff] %v1456_v17   ;;  %v1536_v48 = vpack.c.bf16 %v2050_v41, %v2044_v30 }
 0x108   :  { %1597 = vst [vmem:[#allocation2 + $0xc8] sm:$0xff] %v1541_v40  }
 0x109   :  { %v801_v25 = vadd.f32 %v800_v22, %v738_v20  ;;  %v1667_v26 = vpop.f32.mrb[20].mxu0  ;;  %v669_v27 = vadd.f32 %v1664_v6, %v668_v21  ;;  %1596 = vst [vmem:[#allocation2 + $0xc0] sm:$0xff] %v1536_v48  }
 0x10a   :  { %v476_v29 = vpop.f32.mrb[21].mxu0  ;;  %v742_v49 = vmul.f32 %v1667_v26, %v1667_v26 }
 0x10b   :  { %v670_v31 = vadd.f32 %v669_v27, %v476_v29  ;;  %v740_v32 = vmul.f32 %v476_v29, %v476_v29  ;;  %v802_v33 = vadd.f32 %v801_v25, %v739_v24  ;;  %v1668_v34 = vpop.f32.mrb[22].mxu0  ;;  %v2054_v58 = vpop.f32.mrb[20].mxu1 }
 0x10c   :  { %v1471_v37 = vpack.c.bf16 %v1668_v34, %v1667_v26  ;;  %v479_v39 = vpop.f32.mrb[23].mxu0  ;;  %v743_v53 = vmul.f32 %v1668_v34, %v1668_v34  ;;  %v2056_v61 = vpop.f32.mrb[21].mxu1 }
 0x10d   :  { %v803_v42 = vadd.f32 %v802_v33, %v740_v32  ;;  %v671_v44 = vadd.f32 %v670_v31, %v479_v39  ;;  %v741_v45 = vmul.f32 %v479_v39, %v479_v39  ;;  %v1466_v46 = vpack.c.bf16 %v479_v39, %v476_v29  ;;  %v2058_v5 = vpop.f32.mrb[22].mxu1 }
 0x10e   :  { %1583 = vst [vmem:[#allocation2 + $0x58] sm:$0xff] %v1471_v37   ;;  %v1551_v9 = vpack.c.bf16 %v2058_v5, %v2054_v58  ;;  %v2062_v10 = vpop.f32.mrb[23].mxu1 }
 0x10f   :  { %v672_v50 = vadd.f32 %v1667_v26, %v671_v44  ;;  %v804_v51 = vadd.f32 %v803_v42, %v741_v45  ;;  %1582 = vst [vmem:[#allocation2 + $0x50] sm:$0xff] %v1466_v46   ;;  %v1546_v18 = vpack.c.bf16 %v2062_v10, %v2056_v61 }
 0x110   :  { %1599 = vst [vmem:[#allocation2 + $0xd8] sm:$0xff] %v1551_v9  }
 0x111   :  { %v805_v55 = vadd.f32 %v804_v51, %v742_v49  ;;  %v1671_v56 = vpop.f32.mrb[24].mxu0  ;;  %v673_v57 = vadd.f32 %v1668_v34, %v672_v50  ;;  %1598 = vst [vmem:[#allocation2 + $0xd0] sm:$0xff] %v1546_v18  }
 0x112   :  { %v492_v60 = vpop.f32.mrb[25].mxu0  ;;  %v746_v20 = vmul.f32 %v1671_v56, %v1671_v56 }
 0x113   :  { %v674_v62 = vadd.f32 %v673_v57, %v492_v60  ;;  %v744_v1 = vmul.f32 %v492_v60, %v492_v60  ;;  %v806_v3 = vadd.f32 %v805_v55, %v743_v53  ;;  %v1672_v4 = vpop.f32.mrb[26].mxu0  ;;  %v2066_v29 = vpop.f32.mrb[24].mxu1 }
 0x114   :  { %v1481_v6 = vpack.c.bf16 %v1672_v4, %v1671_v56  ;;  %v495_v8 = vpop.f32.mrb[27].mxu0  ;;  %v747_v24 = vmul.f32 %v1672_v4, %v1672_v4  ;;  %v2068_v32 = vpop.f32.mrb[25].mxu1 }
 0x115   :  { %v807_v13 = vadd.f32 %v806_v3, %v744_v1  ;;  %v675_v15 = vadd.f32 %v674_v62, %v495_v8  ;;  %v745_v16 = vmul.f32 %v495_v8, %v495_v8  ;;  %v1476_v17 = vpack.c.bf16 %v495_v8, %v492_v60  ;;  %v2070_v40 = vpop.f32.mrb[26].mxu1 }
 0x116   :  { %1585 = vst [vmem:[#allocation2 + $0x68] sm:$0xff] %v1481_v6   ;;  %v1561_v45 = vpack.c.bf16 %v2070_v40, %v2066_v29  ;;  %v2074_v46 = vpop.f32.mrb[27].mxu1  ;;  %v752_v3 = vmul.f32 %v1996_v54, %v1996_v54 }
 0x117   :  { %v676_v21 = vadd.f32 %v1671_v56, %v675_v15  ;;  %v808_v22 = vadd.f32 %v807_v13, %v745_v16  ;;  %1584 = vst [vmem:[#allocation2 + $0x60] sm:$0xff] %v1476_v17   ;;  %v1556_v53 = vpack.c.bf16 %v2074_v46, %v2068_v32 }
 0x118   :  { %1601 = vst [vmem:[#allocation2 + $0xe8] sm:$0xff] %v1561_v45  }
 0x119   :  { %v809_v25 = vadd.f32 %v808_v22, %v746_v20  ;;  %v1675_v26 = vpop.f32.mrb[28].mxu0  ;;  %v677_v27 = vadd.f32 %v1672_v4, %v676_v21  ;;  %1600 = vst [vmem:[#allocation2 + $0xe0] sm:$0xff] %v1556_v53   ;;  %v753_v20 = vmul.f32 %v2002_v63, %v2002_v63 }
 0x11a   :  { %v508_v31 = vpop.f32.mrb[29].mxu0  ;;  %v750_v55 = vmul.f32 %v1675_v26, %v1675_v26 }
 0x11b   :  { %v678_v33 = vadd.f32 %v677_v27, %v508_v31  ;;  %v748_v34 = vmul.f32 %v508_v31, %v508_v31  ;;  %v810_v37 = vadd.f32 %v809_v25, %v747_v24  ;;  %v1676_v39 = vpop.f32.mrb[30].mxu0  ;;  %v2080_v4 = vpop.f32.mrb[28].mxu1 }
 0x11c   :  { %v1491_v42 = vpack.c.bf16 %v1676_v39, %v1675_v26  ;;  %v511_v44 = vpop.f32.mrb[31].mxu0  ;;  %v751_v60 = vmul.f32 %v1676_v39, %v1676_v39  ;;  %v2082_v6 = vpop.f32.mrb[29].mxu1 }
 0x11d   :  { %v811_v48 = vadd.f32 %v810_v37, %v748_v34  ;;  %v679_v49 = vadd.f32 %v678_v33, %v511_v44  ;;  %v749_v50 = vmul.f32 %v511_v44, %v511_v44  ;;  %v1486_v51 = vpack.c.bf16 %v511_v44, %v508_v31  ;;  %v2085_v13 = vpop.f32.mrb[30].mxu1 }
 0x11e   :  { %1587 = vst [vmem:[#allocation2 + $0x78] sm:$0xff] %v1491_v42   ;;  %v1571_v15 = vpack.c.bf16 %v2085_v13, %v2080_v4  ;;  %v2089_v16 = vpop.f32.mrb[31].mxu1 }
 0x11f   :  { %v680_v56 = vadd.f32 %v1675_v26, %v679_v49  ;;  %v812_v57 = vadd.f32 %v811_v48, %v749_v50  ;;  %1586 = vst [vmem:[#allocation2 + $0x70] sm:$0xff] %v1486_v51   ;;  %v1566_v21 = vpack.c.bf16 %v2089_v16, %v2082_v6 }
 0x120   :  { %1603 = vst [vmem:[#allocation2 + $0xf8] sm:$0xff] %v1571_v15  }
 0x121   :  { %v813_v62 = vadd.f32 %v812_v57, %v750_v55  ;;  %v681_v1 = vadd.f32 %v1676_v39, %v680_v56  ;;  %1602 = vst [vmem:[#allocation2 + $0xf0] sm:$0xff] %v1566_v21  }
 0x123   :  { %v682_v8 = vadd.f32 %v681_v1, %v1996_v54  ;;  %v814_v9 = vadd.f32 %v813_v62, %v751_v60  ;;  %v754_v54 = vmul.f32 %v1994_v52, %v1994_v52 }
 0x125   :  { %v815_v17 = vadd.f32 %v814_v9, %v752_v3  ;;  %v683_v18 = vadd.f32 %v682_v8, %v2002_v63 }
 0x127   :  { %v684_v22 = vadd.f32 %v1994_v52, %v683_v18  ;;  %v816_v24 = vadd.f32 %v815_v17, %v753_v20 }
 0x128   :  { %1768 = shalt.err (!%p1765_p4)
}
 0x129   :  { %s1769_s8 = scalar_lea.hbm %s2232_s2, 4096 }
 0x12a   :  { %p1770_p5 = scmp.ne.s32.totalorder %s2232_s2, %s1769_s8  ;;  %p1773_p6 = scmp.lt.u32.totalorder %s1769_s8, %s2232_s2 }
 0x12c   :  { %p1775_p7 = pnand %p1773_p6, %p1770_p5 }
 0x12e   :  { %1778 = shalt.err (!%p1775_p7)
}
 0x12f   :  { %s1828_s13 = smov 64   ;;  %s1829_s14 = smov 4   ;;  %v755_v52 = vmul.f32 %v1998_v59, %v1998_v59  ;;  %v817_v63 = vadd.f32 %v816_v24, %v754_v54  ;;  %v685_v25 = vadd.f32 %v1998_v59, %v684_v22  ;;  %v756_v26 = vmul.f32 %v2008_v14, %v2008_v14 }
 0x130   :  { %1186 = dma.vmem_to_hbm [thread:$0]  %s1181_s30, 4096, %s2232_s2, [#allocation3], %s1828_s13, %s1828_s13, %s1829_s14   ;;  %v757_v37 = vmul.f32 %v2014_v23, %v2014_v23  ;;  %v758_v39 = vmul.f32 %v2006_v12, %v2006_v12  ;;  %v759_v59 = vmul.f32 %v2010_v19, %v2010_v19  ;;  %v761_v53 = vmul.f32 %v2026_v47, %v2026_v47 }
 0x131   :  { %v686_v27 = vadd.f32 %v685_v25, %v2008_v14  ;;  %v818_v31 = vadd.f32 %v817_v63, %v755_v52  ;;  %v760_v14 = vmul.f32 %v2020_v38, %v2020_v38  ;;  %v765_v8 = vmul.f32 %v2038_v11, %v2038_v11  ;;  %s1830_s2 = smov [#allocation4]   ;;  %s1831_s18 = smov [#allocation6]  }
 0x132   :  { %v769_v22 = vmul.f32 %v2050_v41, %v2050_v41  ;;  %s1193_s17 = sshll.u32 %s1830_s2, 4  ;;  %s1203_s19 = sshll.u32 %s1831_s18, 4  ;;  %s1194_s17 = int_to_ptr.vmem [resolvable:$true] %s1193_s17  ;;  %s2198_s19 = int_to_ptr.vmem [resolvable:$true] %s1203_s19 }
 0x133   :  { %v819_v33 = vadd.f32 %v818_v31, %v756_v26  ;;  %v687_v34 = vadd.f32 %v686_v27, %v2014_v23  ;;  %s1779_s20 = scalar_lea.vmem %s1194_s17, 16  ;;  %s1783_s21 = scalar_lea.vmem %s1194_s17, 32 }
 0x134   :  { %p1780_p8 = scmp.ne.s32.totalorder %s1194_s17, %s1779_s20  ;;  %p1784_p9 = scmp.lt.s32.totalorder %s1194_s17, %s1194_s17 }
 0x135   :  { %v688_v42 = vadd.f32 %v2006_v12, %v687_v34  ;;  %v820_v44 = vadd.f32 %v819_v33, %v757_v37  ;;  %v762_v12 = vmul.f32 %v2018_v36, %v2018_v36  ;;  %v773_v33 = vmul.f32 %v2062_v10, %v2062_v10  ;;  %p1785_p10 = scmp.lt.s32.totalorder %s1783_s21, %s1779_s20 }
 0x137   :  { %v821_v45 = vadd.f32 %v820_v44, %v758_v39  ;;  %v689_v48 = vadd.f32 %v2010_v19, %v688_v42  ;;  %v763_v19 = vmul.f32 %v2022_v43, %v2022_v43  ;;  %p1786_p11 = por %p1785_p10, %p1784_p9 }
 0x139   :  { %v690_v49 = vadd.f32 %v689_v48, %v2020_v38  ;;  %v822_v50 = vadd.f32 %v821_v45, %v759_v59  ;;  %v764_v38 = vmul.f32 %v2032_v2, %v2032_v2  ;;  %v777_v48 = vmul.f32 %v2074_v46, %v2074_v46  ;;  %p1787_p12 = pnand %p1786_p11, %p1780_p8 }
 0x13b   :  { %v823_v51 = vadd.f32 %v822_v50, %v760_v14  ;;  %v691_v23 = vadd.f32 %v690_v49, %v2026_v47 }
 0x13d   :  { %v692_v55 = vadd.f32 %v2018_v36, %v691_v23  ;;  %v824_v56 = vadd.f32 %v823_v51, %v761_v53  ;;  %v766_v36 = vmul.f32 %v2030_v0, %v2030_v0 }
 0x13f   :  { %v825_v57 = vadd.f32 %v824_v56, %v762_v12  ;;  %v693_v60 = vadd.f32 %v2022_v43, %v692_v55  ;;  %v767_v43 = vmul.f32 %v2034_v7, %v2034_v7  ;;  %v781_v55 = vmul.f32 %v2089_v16, %v2089_v16 }
 0x141   :  { %v694_v62 = vadd.f32 %v693_v60, %v2032_v2  ;;  %v826_v1 = vadd.f32 %v825_v57, %v763_v19  ;;  %v768_v2 = vmul.f32 %v2044_v30, %v2044_v30 }
 0x143   :  { %v827_v3 = vadd.f32 %v826_v1, %v764_v38  ;;  %v695_v47 = vadd.f32 %v694_v62, %v2038_v11 }
 0x145   :  { %v696_v9 = vadd.f32 %v2030_v0, %v695_v47  ;;  %v828_v15 = vadd.f32 %v827_v3, %v765_v8  ;;  %v770_v0 = vmul.f32 %v2042_v28, %v2042_v28 }
 0x147   :  { %v829_v17 = vadd.f32 %v828_v15, %v766_v36  ;;  %v697_v18 = vadd.f32 %v2034_v7, %v696_v9  ;;  %v771_v7 = vmul.f32 %v2046_v35, %v2046_v35 }
 0x149   :  { %v698_v20 = vadd.f32 %v697_v18, %v2044_v30  ;;  %v830_v21 = vadd.f32 %v829_v17, %v767_v43  ;;  %v772_v30 = vmul.f32 %v2056_v61, %v2056_v61 }
 0x14b   :  { %v831_v54 = vadd.f32 %v830_v21, %v768_v2  ;;  %v699_v11 = vadd.f32 %v698_v20, %v2050_v41 }
 0x14d   :  { %v700_v24 = vadd.f32 %v2042_v28, %v699_v11  ;;  %v832_v52 = vadd.f32 %v831_v54, %v769_v22  ;;  %v774_v28 = vmul.f32 %v2054_v58, %v2054_v58 }
 0x14f   :  { %v833_v63 = vadd.f32 %v832_v52, %v770_v0  ;;  %v701_v25 = vadd.f32 %v2046_v35, %v700_v24  ;;  %v775_v35 = vmul.f32 %v2058_v5, %v2058_v5 }
 0x151   :  { %v702_v26 = vadd.f32 %v701_v25, %v2056_v61  ;;  %v834_v27 = vadd.f32 %v833_v63, %v771_v7  ;;  %v776_v61 = vmul.f32 %v2068_v32, %v2068_v32 }
 0x153   :  { %v835_v31 = vadd.f32 %v834_v27, %v772_v30  ;;  %v703_v41 = vadd.f32 %v702_v26, %v2062_v10 }
 0x155   :  { %v704_v34 = vadd.f32 %v2054_v58, %v703_v41  ;;  %v836_v37 = vadd.f32 %v835_v31, %v773_v33  ;;  %v778_v58 = vmul.f32 %v2066_v29, %v2066_v29 }
 0x157   :  { %v837_v39 = vadd.f32 %v836_v37, %v774_v28  ;;  %v705_v42 = vadd.f32 %v2058_v5, %v704_v34  ;;  %v779_v5 = vmul.f32 %v2070_v40, %v2070_v40 }
 0x159   :  { %v706_v44 = vadd.f32 %v705_v42, %v2068_v32  ;;  %v838_v59 = vadd.f32 %v837_v39, %v775_v35  ;;  %v780_v32 = vmul.f32 %v2082_v6, %v2082_v6 }
 0x15b   :  { %v839_v45 = vadd.f32 %v838_v59, %v776_v61  ;;  %v707_v10 = vadd.f32 %v706_v44, %v2074_v46 }
 0x15d   :  { %v708_v14 = vadd.f32 %v2066_v29, %v707_v10  ;;  %v840_v49 = vadd.f32 %v839_v45, %v777_v48  ;;  %v782_v29 = vmul.f32 %v2080_v4, %v2080_v4 }
 0x15f   :  { %v841_v50 = vadd.f32 %v840_v49, %v778_v58  ;;  %v709_v51 = vadd.f32 %v2070_v40, %v708_v14  ;;  %v783_v40 = vmul.f32 %v2085_v13, %v2085_v13 }
 0x161   :  { %v710_v23 = vadd.f32 %v709_v51, %v2082_v6  ;;  %v842_v53 = vadd.f32 %v841_v50, %v779_v5 }
 0x163   :  { %v843_v12 = vadd.f32 %v842_v53, %v780_v32  ;;  %v711_v46 = vadd.f32 %v710_v23, %v2089_v16 }
 0x165   :  { %v712_v56 = vadd.f32 %v2080_v4, %v711_v46  ;;  %v844_v19 = vadd.f32 %v843_v12, %v781_v55 }
 0x167   :  { %v713_v57 = vadd.f32 %v2085_v13, %v712_v56  ;;  %v845_v60 = vadd.f32 %v844_v19, %v782_v29 }
 0x169   :  { %v714_v6 = vrot.slane %v713_v57, 4  ;;  %v846_v38 = vadd.f32 %v845_v60, %v783_v40 }
 0x16b   :  { %v715_v62 = vadd.f32 %v714_v6, %v713_v57  ;;  %v847_v1 = vrot.slane %v846_v38, 4 }
 0x16d   :  { %v716_v3 = vrot.slane %v715_v62, 2  ;;  %v848_v47 = vadd.f32 %v847_v1, %v846_v38 }
 0x16f   :  { %v717_v8 = vadd.f32 %v716_v3, %v715_v62  ;;  %v849_v16 = vrot.slane %v848_v47, 2 }
 0x171   :  { %v718_v36 = vrot.slane %v717_v8, 1  ;;  %v850_v9 = vadd.f32 %v849_v16, %v848_v47 }
 0x173   :  { %v719_v4 = vadd.f32 %v718_v36, %v717_v8  ;;  %v851_v15 = vrot.slane %v850_v9, 1 }
 0x175   :  { %1173 = vst [vmem:[#allocation4] sm:$0x1] %v719_v4  ;;  %v852_v13 = vadd.f32 %v851_v15, %v850_v9 }
 0x176   :  { %1790 = shalt.err (!%p1787_p12)
}
 0x177   :  { %s1791_s24 = scalar_lea.hbm %s2233_s3, 16 }
 0x178   :  { %p1792_p13 = scmp.ne.s32.totalorder %s2233_s3, %s1791_s24  ;;  %p1795_p0 = scmp.lt.u32.totalorder %s1791_s24, %s2233_s3 }
 0x17a   :  { %p1797_p1 = pnand %p1795_p0, %p1792_p13 }
 0x17c   :  { %1800 = shalt.err (!%p1797_p1)
}
 0x17d   :  { %1196 = dma.vmem_to_hbm [thread:$0]  %s1194_s17, 16, %s2233_s3, [#allocation5]   ;;  %1174 = vst [vmem:[#allocation6] sm:$0x1] %v852_v13 }
 0x17e   :  { %s1801_s0 = scalar_lea.vmem %s2198_s19, 16  ;;  %s1805_s30 = scalar_lea.vmem %s2198_s19, 32 }
 0x17f   :  { %p1802_p2 = scmp.ne.s32.totalorder %s2198_s19, %s1801_s0  ;;  %p1806_p3 = scmp.lt.s32.totalorder %s2198_s19, %s2198_s19 }
 0x180   :  { %p1807_p4 = scmp.lt.s32.totalorder %s1805_s30, %s1801_s0 }
 0x182   :  { %p1808_p5 = por %p1807_p4, %p1806_p3 }
 0x184   :  { %p1809_p6 = pnand %p1808_p5, %p1802_p2 }
 0x186   :  { %1812 = shalt.err (!%p1809_p6)
}
 0x187   :  { %s1813_s7 = scalar_lea.hbm %s2234_s4, 16 }
 0x188   :  { %p1814_p7 = scmp.ne.s32.totalorder %s2234_s4, %s1813_s7  ;;  %p1817_p8 = scmp.lt.u32.totalorder %s1813_s7, %s2234_s4 }
 0x18a   :  { %p1819_p9 = pnand %p1817_p8, %p1814_p7 }
 0x18c   :  { %1822 = shalt.err (!%p1819_p9)
}
 0x18d   :  { %1206 = dma.vmem_to_hbm [thread:$0]  %s2198_s19, 16, %s2234_s4, [#allocation5]  }
 0x18e   :  { %1823 = dma.done.wait [#allocation3], 4096  }
 0x18f   :  { %1824 = vsyncadd [#allocation3], 4294963200 }
 0x190   :  { %1825 = dma.done.wait [#allocation5], 32  }
 0x191   :  { %1826 = vsyncadd [#allocation5], 4294967264 }
 0x192   :  { %1216 = vsyncpa [#allocation3], 1 }
 0x193   :  { %1217 = vsyncpa [#allocation5], 1 }

</bundles_post_ra>
